<compile_context>
chip_gen: v7x
topology: tpu7x:2x2x1
jax: 0.10.0
libtpu: 0.0.40
codegen_flags: <defaults>
</compile_context>

<pallas_src>
import numpy as np
import jax
import jax.numpy as jnp
from jax.experimental import pallas as pl
from jax.experimental.pallas import tpu as pltpu


def _fetch_add_kernel(coords_ref, grid_ref, enc_ref, out_ref):
    """out[n, :] = fused_grid[b_n, :, hw_n] + enc[n, :], via one-hot MXU matmuls.

    coords_ref : (N, 1)      VMEM int32   flat NHWC coordinate p = b*HW + hw
    grid_ref   : (B, C, HW)  VMEM (native dtype) NCHW map with (h, w) flattened
    enc_ref    : (N, C)      VMEM
    out_ref    : (N, C)      VMEM
    """
    N, C = out_ref.shape
    B, _, HW = grid_ref.shape

    coords = coords_ref[...]                                       # (N, 1) i32
    lane_p = jax.lax.broadcasted_iota(jnp.int32, (N, HW), 1)       # (N, HW)

    # f32 accumulator seeded with the agent encodings.
    acc = enc_ref[...].astype(jnp.float32)                         # (N, C)

    # B is tiny and static -> unrolled.  One VPU compare + one MXU push per
    # batch; each output element is a single 1.0 * x product, so the gather
    # is bit-exact.
    for b in range(B):
        sel = jnp.where(lane_p == (coords - b * HW), 1.0, 0.0)     # (N, HW) f32
        sel = sel.astype(grid_ref.dtype)
        gb = grid_ref[b]                                           # (C, HW)
        acc = acc + jax.lax.dot_general(
            sel, gb,
            dimension_numbers=(((1,), (1,)), ((), ())),            # contract HW
            preferred_element_type=jnp.float32)                    # (N, C)

    out_ref[...] = acc.astype(out_ref.dtype)


def spatial_fetch_agent(fused_grid, filtered_agent_encodings, decode_coordinates):
    """JAX/Pallas equivalent of SpatialFetchAgent.forward -> (N, C)."""
    B, C, H, W = fused_grid.shape
    N, C_enc = filtered_agent_encodings.shape
    assert C_enc == C
    HW = H * W

    grid = fused_grid.reshape(B, C, HW)                     # pure reshape, native dtype
    coords = decode_coordinates.astype(jnp.int32).reshape(N, 1)
    out_dtype = jnp.result_type(fused_grid.dtype, filtered_agent_encodings.dtype)

    return pl.pallas_call(
        _fetch_add_kernel,
        out_shape=jax.ShapeDtypeStruct((N, C), out_dtype),
        in_specs=[
            pl.BlockSpec(memory_space=pltpu.MemorySpace.VMEM),   # coords (N, 1)
            pl.BlockSpec(memory_space=pltpu.MemorySpace.VMEM),   # grid   (B, C, HW)
            pl.BlockSpec(memory_space=pltpu.MemorySpace.VMEM),   # enc    (N, C)
        ],
        out_specs=pl.BlockSpec(memory_space=pltpu.MemorySpace.VMEM),
    )(coords, grid, filtered_agent_encodings)


if __name__ == "__main__":
    B, C, H, W = 2, 32, 16, 16          # batch, channels, map_h, map_w
    N = 8                               # number of (filtered) agents

    key = jax.random.PRNGKey(0)
    k1, k2, k3 = jax.random.split(key, 3)
    fused_grid = jax.random.normal(k1, (B, C, H, W), jnp.float32)
    filtered_agent_encodings = jax.random.normal(k2, (N, C), jnp.float32)
    decode_coordinates = jax.random.randint(k3, (N,), 0, B * H * W, jnp.int32)
    # duplicate coordinate is harmless for a gather but mirrors real usage
    decode_coordinates = decode_coordinates.at[3].set(decode_coordinates[1])

    out = spatial_fetch_agent(fused_grid, filtered_agent_encodings,
                              decode_coordinates)
    out = jax.block_until_ready(out)

    # ---- pure-numpy reference of the PyTorch semantics ----
    g = np.asarray(fused_grid)
    flat = np.transpose(g, (0, 2, 3, 1)).reshape(B * H * W, C)   # NHWC flatten
    ref = flat[np.asarray(decode_coordinates)] + np.asarray(filtered_agent_encodings)

    assert out.shape == (N, C)
    np.testing.assert_allclose(np.asarray(out), ref, rtol=1e-6, atol=1e-6)
    print("KERNEL_OK")
</pallas_src>

<mosaic_0001>
module attributes {stable_mosaic.version = 11 : i64} {
  func.func @_fetch_add_kernel(%arg0: memref<8x1xi32, #tpu.memory_space<vmem>>, %arg1: memref<2x32x256xf32, #tpu.memory_space<vmem>>, %arg2: memref<8x32xf32, #tpu.memory_space<vmem>>, %arg3: memref<8x32xf32, #tpu.memory_space<vmem>>) attributes {dimension_semantics = [], scalar_prefetch = 0 : i64, scratch_operands = 0 : i64, tpu.core_type = #tpu.core_type<tc>} {
    %c0 = arith.constant 0 : index
    %c0_0 = arith.constant 0 : index
    %0 = vector.load %arg0[%c0, %c0_0] : memref<8x1xi32, #tpu.memory_space<vmem>>, vector<8x1xi32>
    %1 = tpu.iota {dimensions = array<i32: 1>} : vector<8x256xi32>
    %c0_1 = arith.constant 0 : index
    %c0_2 = arith.constant 0 : index
    %2 = vector.load %arg2[%c0_1, %c0_2] : memref<8x32xf32, #tpu.memory_space<vmem>>, vector<8x32xf32>
    %c0_i32 = arith.constant 0 : i32
    %3 = vector.broadcast %c0_i32 : i32 to vector<8x1xi32>
    %4 = arith.subi %0, %3 : vector<8x1xi32>
    %5 = vector.broadcast %4 : vector<8x1xi32> to vector<8x256xi32>
    %6 = arith.cmpi eq, %1, %5 : vector<8x256xi32>
    %cst = arith.constant 1.000000e+00 : f32
    %cst_3 = arith.constant 0.000000e+00 : f32
    %7 = vector.broadcast %cst : f32 to vector<8x256xf32>
    %8 = vector.broadcast %cst_3 : f32 to vector<8x256xf32>
    %9 = arith.select %6, %7, %8 : vector<8x256xi1>, vector<8x256xf32>
    %c0_4 = arith.constant 0 : index
    %c0_5 = arith.constant 0 : index
    %c0_6 = arith.constant 0 : index
    %10 = vector.load %arg1[%c0_4, %c0_5, %c0_6] : memref<2x32x256xf32, #tpu.memory_space<vmem>>, vector<1x32x256xf32>
    %11 = vector.shape_cast %10 : vector<1x32x256xf32> to vector<32x256xf32>
    %cst_7 = arith.constant dense<0.000000e+00> : vector<8x32xf32>
    %12 = tpu.matmul %9, %11, %cst_7 {dimension_numbers = #tpu.dot_dimension_numbers<[1], [1], [0], [0], [0, 0, 1, 0], [], []>} : vector<8x256xf32>, vector<32x256xf32>, vector<8x32xf32> -> vector<8x32xf32>
    %13 = arith.addf %2, %12 : vector<8x32xf32>
    %c256_i32 = arith.constant 256 : i32
    %14 = vector.broadcast %c256_i32 : i32 to vector<8x1xi32>
    %15 = arith.subi %0, %14 : vector<8x1xi32>
    %16 = vector.broadcast %15 : vector<8x1xi32> to vector<8x256xi32>
    %17 = arith.cmpi eq, %1, %16 : vector<8x256xi32>
    %cst_8 = arith.constant 1.000000e+00 : f32
    %cst_9 = arith.constant 0.000000e+00 : f32
    %18 = vector.broadcast %cst_8 : f32 to vector<8x256xf32>
    %19 = vector.broadcast %cst_9 : f32 to vector<8x256xf32>
    %20 = arith.select %17, %18, %19 : vector<8x256xi1>, vector<8x256xf32>
    %c1 = arith.constant 1 : index
    %c0_10 = arith.constant 0 : index
    %c0_11 = arith.constant 0 : index
    %21 = vector.load %arg1[%c1, %c0_10, %c0_11] : memref<2x32x256xf32, #tpu.memory_space<vmem>>, vector<1x32x256xf32>
    %22 = vector.shape_cast %21 : vector<1x32x256xf32> to vector<32x256xf32>
    %cst_12 = arith.constant dense<0.000000e+00> : vector<8x32xf32>
    %23 = tpu.matmul %20, %22, %cst_12 {dimension_numbers = #tpu.dot_dimension_numbers<[1], [1], [0], [0], [0, 0, 1, 0], [], []>} : vector<8x256xf32>, vector<32x256xf32>, vector<8x32xf32> -> vector<8x32xf32>
    %24 = arith.addf %13, %23 : vector<8x32xf32>
    %c0_13 = arith.constant 0 : index
    %c0_14 = arith.constant 0 : index
    %25 = vector.load %arg3[%c0_13, %c0_14] : memref<8x32xf32, #tpu.memory_space<vmem>>, vector<8x32xf32>
    tpu.vector_store %arg3[%c0_13, %c0_14], %24 {strides = array<i32>} : memref<8x32xf32, #tpu.memory_space<vmem>>, vector<8x32xf32>,
    return
  }
}

</mosaic_0001>

<bundles_post_ra>
// kernel: tpu_custom_call.1
= control target key start
LH: loop header
LB: loop body
LE: loop exit
PB: predicated region body
PF: predicated region fallthrough
CT: control target
= control target key end

     0   :  { %8 = vsyncpa [#allocation3], 0  ;;  %s359_s0 = inlined_call_operand.vmem [shape: s32[8,1], index: 0, kind: input, shape index: {}]   ;;  %s360_s1 = inlined_call_operand.hbm [shape: f32[2,32,256], index: 1, kind: input, shape index: {}]   ;;  %s361_s2 = inlined_call_operand.vmem [shape: f32[8,32], index: 2, kind: input, shape index: {}]   ;;  %s362_s3 = inlined_call_operand.hbm [shape: f32[8,32], index: 3, kind: output, shape index: {}]  }
   0x1   :  { %9 = vsyncpa [#allocation4], 0  ;;  %s303_s12 = smov [#allocation2]   ;;  %s255_s16 = scalar_lea.hbm %s360_s1, 2048 }
   0x2   :  { %s17_s13 = sshll.u32 %s303_s12, 4  ;;  %p256_p0 = scmp.ne.s32.totalorder %s360_s1, %s255_s16  ;;  %s18_s13 = int_to_ptr.vmem [resolvable:$true] %s17_s13 }
   0x3   :  { %p259_p1 = scmp.lt.u32.totalorder %s255_s16, %s360_s1 }
   0x5   :  { %p261_p2 = pnand %p259_p1, %p256_p0 }
   0x7   :  { %264 = shalt.err (!%p261_p2)
}
   0x8   :  { %s265_s21 = scalar_lea.vmem %s18_s13, 2048  ;;  %p270_p4 = scmp.lt.s32.totalorder %s18_s13, %s18_s13 }
   0x9   :  { %p266_p3 = scmp.ne.s32.totalorder %s18_s13, %s265_s21  ;;  %p271_p5 = scmp.lt.s32.totalorder %s265_s21, %s265_s21 }
   0xb   :  { %p272_p6 = por %p271_p5, %p270_p4 }
   0xd   :  { %p273_p7 = pnand %p272_p6, %p266_p3 }
   0xf   :  { %276 = shalt.err (!%p273_p7)
}
  0x10   :  { %s304_s22 = smov 256   ;;  %s305_s23 = smov 16  }
  0x11   :  { %23 = dma.hbm_to_vmem [thread:$0]  %s360_s1, 2048, %s18_s13, [#allocation3], %s304_s22, %s304_s22, %s305_s23  }
  0x12   :  { %299 = dma.done.wait [#allocation3], 2048  }
  0x13   :  { %300 = vsyncadd [#allocation3], 4294965248  ;;  %v306_v0 = vmov 0   ;;  %v29_v1 = vld [vmem:[%s359_s0] sm:$0xff]  ;;  %v42_v2 = vld [vmem:[#allocation2 + $0x8] sm:$0xff]  ;;  %v30_v27 = vlaneseq  ;;  %v307_v31 = vmov 1.0  }
  0x14   :  { %254 = vset.pattern.permute.xlu0 %v306_v0  ;;  %v44_v3 = vld [vmem:[#allocation2 + $0x18] sm:$0xff]  ;;  %v227_v4 = vadd.s32 4294967040, %v29_v1  ;;  %v41_v6 = vld [vmem:[#allocation2] sm:$0xff]  ;;  %v43_v7 = vld [vmem:[#allocation2 + $0x10] sm:$0xff]  ;;  %s308_s28 = smov [#allocation5]   ;;  %vm208_vm4 = vcmask 261120  }
  0x15   :  { %35 = vperm.xlu0 %254, %v29_v1   ;;  %v230_v5 = vpack.c.bf16 %v44_v3, %v42_v2  ;;  %v130_v8 = vld [vmem:[#allocation2 + $0x48] sm:$0xff]  ;;  %v232_v9 = vpack.c.bf16 %v43_v7, %v41_v6  ;;  %v132_v10 = vld [vmem:[#allocation2 + $0x58] sm:$0xff]  ;;  %v129_v11 = vld [vmem:[#allocation2 + $0x40] sm:$0xff]  ;;  %v31_v28 = vand.u32 127, %v30_v27  ;;  %s216_s29 = sshll.u32 %s308_s28, 4  ;;  %s217_s29 = int_to_ptr.vmem [resolvable:$true] %s216_s29 }
  0x16   :  { %v131_v12 = vld [vmem:[#allocation2 + $0x50] sm:$0xff]  ;;  %v238_v13 = vpack.c.bf16 %v132_v10, %v130_v8  ;;  %v46_v15 = vld [vmem:[#allocation2 + $0x28] sm:$0xff]  ;;  %v48_v16 = vld [vmem:[#allocation2 + $0x38] sm:$0xff]  ;;  %s277_s30 = scalar_lea.vmem %s217_s29, 128  ;;  %p282_p9 = scmp.lt.s32.totalorder %s217_s29, %s217_s29 }
  0x17   :  { %231 = vmatprep.subr.bf16.mxu1 %v230_v5  ;;  %v240_v14 = vpack.c.bf16 %v131_v12, %v129_v11  ;;  %v234_v17 = vpack.c.bf16 %v48_v16, %v46_v15  ;;  %v134_v18 = vld [vmem:[#allocation2 + $0x68] sm:$0xff]  ;;  %v136_v19 = vld [vmem:[#allocation2 + $0x78] sm:$0xff]  ;;  %v45_v20 = vld [vmem:[#allocation2 + $0x20] sm:$0xff]  ;;  %v32_v29 = vadd.s32 128, %v31_v28  ;;  %p278_p8 = scmp.ne.s32.totalorder %s217_s29, %s277_s30  ;;  %p283_p10 = scmp.lt.s32.totalorder %s277_s30, %s277_s30 }
  0x18   :  { %233 = vmatpush1.bf16.xpose.msra.mxu1 %v232_v9  ;;  %239 = vmatprep.subr.bf16.mxu0 %v238_v13  ;;  %v47_v21 = vld [vmem:[#allocation2 + $0x30] sm:$0xff]  ;;  %v242_v22 = vpack.c.bf16 %v136_v19, %v134_v18  ;;  %v133_v23 = vld [vmem:[#allocation2 + $0x60] sm:$0xff] }
  0x19   :  { %122 = vperm.xlu0 %254, %v227_v4   ;;  %241 = vmatpush1.bf16.xpose.msra.mxu0 %v240_v14  ;;  %v135_v24 = vld [vmem:[#allocation2 + $0x70] sm:$0xff]  ;;  %v236_v25 = vpack.c.bf16 %v47_v21, %v45_v20  ;;  %p284_p11 = por %p283_p10, %p282_p9 }
  0x1a   :  { %235 = vmatprep.subr.bf16.mxu1 %v234_v17  ;;  %243 = vmatprep.subr.bf16.mxu0 %v242_v22  ;;  %v244_v26 = vpack.c.bf16 %v135_v24, %v133_v23  ;;  %v33_v33 = vld [vmem:[%s361_s2] sm:$0xff] }
  0x1b   :  { %p285_p12 = pnand %p284_p11, %p278_p8 }
  0x20   :  { %237 = vmatpush1.bf16.xpose.msra.mxu1 %v236_v25 }
  0x21   :  { %245 = vmatpush1.bf16.xpose.msra.mxu0 %v244_v26 }
  0x94   :  { %v36_v30 = vpop.permute.xlu0 %35 }
  0x95   :  { %vm37_vm0 = vcmp.eq.s32.totalorder %v31_v28, %v36_v30  ;;  %vm38_vm1 = vcmp.eq.s32.totalorder %v32_v29, %v36_v30 }
  0x96   :  { %225 = vmatprep.mubr.msk.f32.mxu1 %vm38_vm1, %v307_v31 }
  0x97   :  { %226 = vmatmul.mubr.msk.f32.vlgmr.msra.gmra.mrb[0].mxu1 %vm37_vm0, %v307_v31 }
  0x98   :  { %v123_v32 = vpop.permute.xlu0 %122 }
  0x99   :  { %vm124_vm2 = vcmp.eq.s32.totalorder %v31_v28, %v123_v32  ;;  %vm125_vm3 = vcmp.eq.s32.totalorder %v32_v29, %v123_v32 }
  0x9a   :  { %228 = vmatprep.mubr.msk.f32.mxu0 %vm125_vm3, %v307_v31 }
  0x9b   :  { %229 = vmatmul.mubr.msk.f32.vlgmr.msra.gmra.mrb[0].mxu0 %vm124_vm2, %v307_v31 }
 0x16a   :  { %v115_v34 = vpop.f32.mrb[0].mxu1 }
 0x16b   :  { %v117_v35 = vpop.f32.mrb[1].mxu1  ;;  %v119_v36 = vadd.f32 %v115_v34, %v33_v33 }
 0x16e   :  { %v203_v37 = vpop.f32.mrb[0].mxu0 }
 0x16f   :  { %v207_v38 = vadd.f32 %v203_v37, %v119_v36  ;;  %v205_v39 = vpop.f32.mrb[1].mxu0 }
 0x171   :  { %209 = vst.msk [vmem:[#allocation5] sm:$0xff] %vm208_vm4, %v207_v38 }
 0x172   :  { %288 = shalt.err (!%p285_p12)
}
 0x173   :  { %s289_s5 = scalar_lea.hbm %s362_s3, 128 }
 0x174   :  { %p290_p13 = scmp.ne.s32.totalorder %s362_s3, %s289_s5  ;;  %p293_p0 = scmp.lt.u32.totalorder %s289_s5, %s362_s3 }
 0x176   :  { %p295_p1 = pnand %p293_p0, %p290_p13 }
 0x178   :  { %298 = shalt.err (!%p295_p1)
}
 0x179   :  { %219 = dma.vmem_to_hbm [thread:$0]  %s217_s29, 128, %s362_s3, [#allocation4]  }
 0x17a   :  { %301 = dma.done.wait [#allocation4], 128  }
 0x17b   :  { %302 = vsyncadd [#allocation4], 4294967168 }
 0x17c   :  { %223 = vsyncpa [#allocation3], 1 }
 0x17d   :  { %224 = vsyncpa [#allocation4], 1 }

</bundles_post_ra>
